<compile_context>
chip_gen: v5e
topology: v5e:2x2
jax: 0.10.0
libtpu: 0.0.40
codegen_flags: <defaults>
</compile_context>

<pallas_src>
import math
import jax
import jax.numpy as jnp
from jax.experimental import pallas as pl
from jax.experimental.pallas import tpu as pltpu

# ---------------- configuration (the `opt` namespace) ----------------
HIDDEN = 32          # opt.hiddenSize
N_NODE = 50          # vocabulary size
STEP = 1             # opt.step (GNN propagation steps)
ALPHA = 0.5          # opt.alpha
BETA = 0.5           # opt.beta
A_COEF = 0.5         # opt.a
B_COEF = 0.5         # opt.b
DEGREE = 2           # opt.degree (idempotent loop in reference -> single bmm)
SGC_EMBED = 1        # opt.sgc_embed
NORMALIZE = False    # opt.normalize
GNN_EMBED = 2        # opt.gnn_embed


# ---------------- fused Pallas kernel ----------------

def _fused_session_graph_kernel(a_ref, aio_ref, h_ref, sc_ref, w_ref, b_ref, o_ref):
    """Per batch-tile: SGC bmm + folded gated-GNN cell (STEP steps) + blend.

    a_ref   : (Bt, N, N)    session adjacency                (bf16)
    aio_ref : (Bt, N, 2N)   [A_in | A_out]                   (bf16)
    h_ref   : (Bt, N, H)    embedded items h0                (bf16)
    sc_ref  : (Bt, N, 1)    a*beta*(1 - diag(A))             (f32)
    w_ref   : (3, H, 3H)    [Wfold_in, Wfold_out, W_hh^T]    (bf16)
    b_ref   : (4, 3H)       [c_in, c_out, b_gi, b_hh]        (f32)
    o_ref   : (Bt*N, H)     blended output                   (f32)
    """
    Bt, N, H = h_ref.shape
    G = 3 * H
    BN = Bt * N

    h0 = h_ref[...]                              # (Bt, N, H) bf16
    hb = h0.reshape(BN, H)                       # flat bf16 (layout-trivial: N=8, H=32)
    hf = hb.astype(jnp.float32)                  # f32 running hidden state

    # ---------------- SGC branch ----------------
    # a*sgc = (a*alpha) * (A @ h0) + a*beta*(1 - diag(A)) ⊙ h0
    sgc = jnp.einsum("bij,bjh->bih", a_ref[...], h0,
                     preferred_element_type=jnp.float32)            # (Bt, N, H) f32
    base = (A_COEF * ALPHA) * sgc + sc_ref[...] * h0.astype(jnp.float32)
    base = base.reshape(BN, H)                                      # (BN, H) f32

    # ---------------- gated-GNN branch (edge linears folded into gates) ----------------
    aio = aio_ref[...]                           # (Bt, N, 2N) bf16
    w_in, w_out, w_hh = w_ref[0], w_ref[1], w_ref[2]                # (H, 3H) each
    c_in = b_ref[0:1, :]                         # (1, 3H) folded edge-in bias
    c_out = b_ref[1:2, :]                        # (1, 3H) folded edge-out bias
    b_gi = b_ref[2:3, :]                         # (1, 3H) b_iah/b_oah/b_ih folded
    b_hh = b_ref[3:4, :]                         # (1, 3H)

    for _ in range(STEP):
        # three wide dense matmuls, all with the same (BN, H) left operand
        x_in = jnp.dot(hb, w_in, preferred_element_type=jnp.float32) + c_in    # (BN, 3H)
        x_out = jnp.dot(hb, w_out, preferred_element_type=jnp.float32) + c_out  # (BN, 3H)
        gh = jnp.dot(hb, w_hh, preferred_element_type=jnp.float32) + b_hh       # (BN, 3H)

        # one fused batched adjacency product: Aio (Bt,N,2N) @ [X_in; X_out] (Bt,2N,3H)
        x = jnp.concatenate([x_in.reshape(Bt, N, G), x_out.reshape(Bt, N, G)],
                            axis=1).astype(jnp.bfloat16)            # (Bt, 2N, 3H)
        gi = jnp.einsum("bij,bjh->bih", aio, x,
                        preferred_element_type=jnp.float32).reshape(BN, G) + b_gi

        # GRU-style gates (sliced from the 96-wide results)
        rz = gi + gh
        resetgate = jax.nn.sigmoid(rz[:, :H])
        inputgate = jax.nn.sigmoid(rz[:, H:2 * H])
        newgate = jnp.tanh(gi[:, 2 * H:] + resetgate * gh[:, 2 * H:])
        hf = newgate + inputgate * (hf - newgate)
        hb = hf.astype(jnp.bfloat16)             # matmul operand for the next step

    # ---------------- blend: a * sgc_hidden + b * gnn_hidden ----------------
    o_ref[...] = (base + B_COEF * hf).astype(o_ref.dtype)


# ---------------- wrapper ----------------

def _choose_batch_tile(batch, target=256):
    """Batch-tile size: large enough to amortize per-grid-step overhead, but
    capped at ceil(batch/2) so the 'parallel' grid axis has >= 2 steps (v7x)."""
    bt = min(target, batch)
    if batch >= 2:
        bt = min(bt, (batch + 1) // 2)
    return max(bt, 1)


def fused_session_graph(A, A_in_out, hidden, w_pack, b_pack):
    B, N, H = hidden.shape
    G = 3 * H

    # SGC diagonal term precomputed on the wrapper side (removes in-kernel eye/A_mod)
    diag_a = jnp.diagonal(A, axis1=1, axis2=2)                       # (B, N)
    sgc_scale = ((A_COEF * BETA) * (1.0 - diag_a))[:, :, None].astype(jnp.float32)

    # bf16 operands for the MXU; accumulation stays f32 inside the kernel.
    A_b = A.astype(jnp.bfloat16)
    Aio_b = A_in_out.astype(jnp.bfloat16)
    h_b = hidden.astype(jnp.bfloat16)

    Bt = _choose_batch_tile(B)
    grid_b = pl.cdiv(B, Bt)
    B_pad = grid_b * Bt
    if B_pad != B:
        pad = B_pad - B
        A_b = jnp.pad(A_b, ((0, pad), (0, 0), (0, 0)))
        Aio_b = jnp.pad(Aio_b, ((0, pad), (0, 0), (0, 0)))
        h_b = jnp.pad(h_b, ((0, pad), (0, 0), (0, 0)))
        sgc_scale = jnp.pad(sgc_scale, ((0, pad), (0, 0), (0, 0)))

    out_flat = pl.pallas_call(
        _fused_session_graph_kernel,
        out_shape=jax.ShapeDtypeStruct((B_pad * N, H), jnp.float32),
        grid=(grid_b,),
        in_specs=[
            pl.BlockSpec((Bt, N, N), lambda b: (b, 0, 0)),        # A
            pl.BlockSpec((Bt, N, 2 * N), lambda b: (b, 0, 0)),    # A_in_out
            pl.BlockSpec((Bt, N, H), lambda b: (b, 0, 0)),        # h0
            pl.BlockSpec((Bt, N, 1), lambda b: (b, 0, 0)),        # SGC diag scale
            pl.BlockSpec((3, H, G), lambda b: (0, 0, 0)),         # folded weights
            pl.BlockSpec((4, G), lambda b: (0, 0)),               # folded biases
        ],
        out_specs=pl.BlockSpec((Bt * N, H), lambda b: (b, 0)),
        compiler_params=pltpu.CompilerParams(
            dimension_semantics=("parallel",),
            vmem_limit_bytes=48 * 1024 * 1024),
    )(A_b, Aio_b, h_b, sgc_scale, w_pack, b_pack)

    return out_flat.reshape(B_pad, N, H)[:B]


# ---------------- parameter init (deterministic, mimics reset_parameters) ----------------

def init_params(key, n_node, hidden):
    stdv = 1.0 / math.sqrt(hidden)
    H = hidden
    shapes = [
        ("embedding", (n_node, H)),
        ("w_edge_in", (H, H)), ("b_edge_in", (H,)),
        ("w_edge_out", (H, H)), ("b_edge_out", (H,)),
        ("b_iah", (H,)), ("b_oah", (H,)),
        ("w_ih", (3 * H, 2 * H)), ("b_ih", (3 * H,)),
        ("w_hh", (3 * H, H)), ("b_hh", (3 * H,)),
    ]
    keys = jax.random.split(key, len(shapes))
    raw = {n: jax.random.uniform(k, s, jnp.float32, -stdv, stdv)
           for (n, s), k in zip(shapes, keys)}

    # Fold the edge linears (weight AND bias) into the ih gate weights:
    #   gi = A_in @ (h @ Wfold_in + c_in) + A_out @ (h @ Wfold_out + c_out) + b_gi
    w_ih_t = raw["w_ih"].T                      # (2H, 3H)
    wih_in, wih_out = w_ih_t[:H, :], w_ih_t[H:, :]
    w_pack = jnp.stack([
        raw["w_edge_in"].T @ wih_in,            # 0: Wfold_in   (H, 3H)
        raw["w_edge_out"].T @ wih_out,          # 1: Wfold_out  (H, 3H)
        raw["w_hh"].T,                          # 2: W_hh^T     (H, 3H)
    ], axis=0).astype(jnp.bfloat16)             # (3, H, 3H)

    b_pack = jnp.stack([
        raw["b_edge_in"] @ wih_in,                                   # 0: c_in
        raw["b_edge_out"] @ wih_out,                                 # 1: c_out
        raw["b_iah"] @ wih_in + raw["b_oah"] @ wih_out + raw["b_ih"],  # 2: b_gi
        raw["b_hh"],                                                 # 3: b_hh
    ], axis=0).astype(jnp.float32)              # (4, 3H)

    return {"embedding": raw["embedding"], "w_pack": w_pack, "b_pack": b_pack,
            "raw": raw}


# ---------------- SessionGraph.forward ----------------

@jax.jit
def session_graph_forward(params, inputs, A, A_in_out):
    # embedding lookup (glue gather stays in plain JAX)
    hidden = params["embedding"][inputs]          # (B, N, H)
    return fused_session_graph(A, A_in_out, hidden,
                               params["w_pack"], params["b_pack"])


# ---------------- pure-JAX reference (mirrors the PyTorch math) ----------------

def reference_forward(raw, inputs, A, A_in_out):
    h0 = raw["embedding"][inputs]
    B, N, H = h0.shape
    eye = jnp.eye(N, dtype=A.dtype)
    A_mod = ALPHA * A + BETA * (1.0 - A) * eye
    sgc = jnp.einsum("bij,bjh->bih", A_mod, h0)
    h = h0
    A_in, A_out = A_in_out[:, :, :N], A_in_out[:, :, N:]
    for _ in range(STEP):
        ei = h @ raw["w_edge_in"].T + raw["b_edge_in"]
        eo = h @ raw["w_edge_out"].T + raw["b_edge_out"]
        input_in = jnp.einsum("bij,bjh->bih", A_in, ei) + raw["b_iah"]
        input_out = jnp.einsum("bij,bjh->bih", A_out, eo) + raw["b_oah"]
        inp = jnp.concatenate([input_in, input_out], axis=2)
        gi = inp @ raw["w_ih"].T + raw["b_ih"]
        gh = h @ raw["w_hh"].T + raw["b_hh"]
        i_r, i_i, i_n = gi[..., :H], gi[..., H:2 * H], gi[..., 2 * H:]
        h_r, h_i, h_n = gh[..., :H], gh[..., H:2 * H], gh[..., 2 * H:]
        r = jax.nn.sigmoid(i_r + h_r)
        z = jax.nn.sigmoid(i_i + h_i)
        n = jnp.tanh(i_n + r * h_n)
        h = n + z * (h - n)
    return A_COEF * sgc + B_COEF * h


# ---------------- main ----------------

if __name__ == "__main__":
    B, N, H = 2, 8, HIDDEN
    key = jax.random.PRNGKey(0)
    k_par, k_idx, k_a, k_aio = jax.random.split(key, 4)

    params = init_params(k_par, N_NODE, H)

    inputs = jax.random.randint(k_idx, (B, N), 0, N_NODE, dtype=jnp.int32)   # item ids
    A = jax.random.uniform(k_a, (B, N, N), jnp.float32)                       # adjacency
    A_in_out = jax.random.uniform(k_aio, (B, N, 2 * N), jnp.float32)          # [A_in|A_out]

    out = session_graph_forward(params, inputs, A, A_in_out)
    out = jax.block_until_ready(out)
    assert out.shape == (B, N, H) and out.dtype == jnp.float32

    ref = jax.block_until_ready(reference_forward(params["raw"], inputs, A, A_in_out))
    max_err = float(jnp.max(jnp.abs(out - ref)))
    # bf16 operands (A, Aio, h0, folded weights) -> slightly looser tolerance
    assert max_err < 2e-2, f"mismatch vs reference: {max_err}"

    print("KERNEL_OK")
</pallas_src>

<mosaic_0001>
module attributes {stable_mosaic.version = 11 : i64} {
  func.func @_fused_session_graph_kernel(%arg0: i32, %arg1: memref<1x8x8xbf16, #tpu.memory_space<vmem>>, %arg2: memref<1x8x16xbf16, #tpu.memory_space<vmem>>, %arg3: memref<1x8x32xbf16, #tpu.memory_space<vmem>>, %arg4: memref<1x8x1xf32, #tpu.memory_space<vmem>>, %arg5: memref<3x32x96xbf16, #tpu.memory_space<vmem>>, %arg6: memref<4x96xf32, #tpu.memory_space<vmem>>, %arg7: memref<8x32xf32, #tpu.memory_space<vmem>>) attributes {dimension_semantics = [#tpu.dimension_semantics<parallel>], iteration_bounds = array<i64: 2>, scalar_prefetch = 0 : i64, scratch_operands = 0 : i64, tpu.core_type = #tpu.core_type<tc>, window_params = [{transform_indices = @transform_0, window_bounds = array<i64: 1, 8, 8>}, {transform_indices = @transform_1, window_bounds = array<i64: 1, 8, 16>}, {transform_indices = @transform_2, window_bounds = array<i64: 1, 8, 32>}, {transform_indices = @transform_3, window_bounds = array<i64: 1, 8, 1>}, {pipeline_mode = #tpu.pipeline_mode<synchronous>, transform_indices = @transform_4, window_bounds = array<i64: 3, 32, 96>}, {pipeline_mode = #tpu.pipeline_mode<synchronous>, transform_indices = @transform_5, window_bounds = array<i64: 4, 96>}, {transform_indices = @transform_6, window_bounds = array<i64: 8, 32>}]} {
    %c0 = arith.constant 0 : index
    %c0_0 = arith.constant 0 : index
    %c0_1 = arith.constant 0 : index
    %0 = vector.load %arg3[%c0, %c0_0, %c0_1] : memref<1x8x32xbf16, #tpu.memory_space<vmem>>, vector<1x8x32xbf16>
    %1 = vector.shape_cast %0 : vector<1x8x32xbf16> to vector<8x32xbf16>
    %2 = arith.extf %1 : vector<8x32xbf16> to vector<8x32xf32>
    %c0_2 = arith.constant 0 : index
    %c0_3 = arith.constant 0 : index
    %c0_4 = arith.constant 0 : index
    %3 = vector.load %arg1[%c0_2, %c0_3, %c0_4] : memref<1x8x8xbf16, #tpu.memory_space<vmem>>, vector<1x8x8xbf16>
    "tpu.trace_start"() <{level = 10 : i32, message = "bij,bjh->bih"}> : () -> ()
    %cst = arith.constant dense<0.000000e+00> : vector<1x8x32xf32>
    %4 = tpu.matmul %3, %0, %cst {dimension_numbers = #tpu.dot_dimension_numbers<[2], [1], [1], [2], [0, 0, 0, 1, 1, 2], [0], [0]>} : vector<1x8x8xbf16>, vector<1x8x32xbf16>, vector<1x8x32xf32> -> vector<1x8x32xf32>
    "tpu.trace_stop"() : () -> ()
    %cst_5 = arith.constant 2.500000e-01 : f32
    %5 = vector.broadcast %cst_5 : f32 to vector<1x8x32xf32>
    %6 = arith.mulf %5, %4 : vector<1x8x32xf32>
    %c0_6 = arith.constant 0 : index
    %c0_7 = arith.constant 0 : index
    %c0_8 = arith.constant 0 : index
    %7 = vector.load %arg4[%c0_6, %c0_7, %c0_8] : memref<1x8x1xf32, #tpu.memory_space<vmem>>, vector<1x8x1xf32>
    %8 = arith.extf %0 : vector<1x8x32xbf16> to vector<1x8x32xf32>
    %9 = vector.broadcast %7 : vector<1x8x1xf32> to vector<1x8x32xf32>
    %10 = arith.mulf %9, %8 : vector<1x8x32xf32>
    %11 = arith.addf %6, %10 : vector<1x8x32xf32>
    %12 = vector.shape_cast %11 : vector<1x8x32xf32> to vector<8x32xf32>
    %c0_9 = arith.constant 0 : index
    %c0_10 = arith.constant 0 : index
    %c0_11 = arith.constant 0 : index
    %13 = vector.load %arg2[%c0_9, %c0_10, %c0_11] : memref<1x8x16xbf16, #tpu.memory_space<vmem>>, vector<1x8x16xbf16>
    %c0_12 = arith.constant 0 : index
    %c0_13 = arith.constant 0 : index
    %c0_14 = arith.constant 0 : index
    %14 = vector.load %arg5[%c0_12, %c0_13, %c0_14] : memref<3x32x96xbf16, #tpu.memory_space<vmem>>, vector<1x32x96xbf16>
    %15 = vector.shape_cast %14 : vector<1x32x96xbf16> to vector<32x96xbf16>
    %c1 = arith.constant 1 : index
    %c0_15 = arith.constant 0 : index
    %c0_16 = arith.constant 0 : index
    %16 = vector.load %arg5[%c1, %c0_15, %c0_16] : memref<3x32x96xbf16, #tpu.memory_space<vmem>>, vector<1x32x96xbf16>
    %17 = vector.shape_cast %16 : vector<1x32x96xbf16> to vector<32x96xbf16>
    %c2 = arith.constant 2 : index
    %c0_17 = arith.constant 0 : index
    %c0_18 = arith.constant 0 : index
    %18 = vector.load %arg5[%c2, %c0_17, %c0_18] : memref<3x32x96xbf16, #tpu.memory_space<vmem>>, vector<1x32x96xbf16>
    %19 = vector.shape_cast %18 : vector<1x32x96xbf16> to vector<32x96xbf16>
    %c0_19 = arith.constant 0 : index
    %c0_20 = arith.constant 0 : index
    %20 = vector.load %arg6[%c0_19, %c0_20] : memref<4x96xf32, #tpu.memory_space<vmem>>, vector<1x96xf32>
    %c1_21 = arith.constant 1 : index
    %c0_22 = arith.constant 0 : index
    %21 = vector.load %arg6[%c1_21, %c0_22] : memref<4x96xf32, #tpu.memory_space<vmem>>, vector<1x96xf32>
    %c2_23 = arith.constant 2 : index
    %c0_24 = arith.constant 0 : index
    %22 = vector.load %arg6[%c2_23, %c0_24] : memref<4x96xf32, #tpu.memory_space<vmem>>, vector<1x96xf32>
    %c3 = arith.constant 3 : index
    %c0_25 = arith.constant 0 : index
    %23 = vector.load %arg6[%c3, %c0_25] : memref<4x96xf32, #tpu.memory_space<vmem>>, vector<1x96xf32>
    %cst_26 = arith.constant dense<0.000000e+00> : vector<8x96xf32>
    %24 = tpu.matmul %1, %15, %cst_26 {dimension_numbers = #tpu.dot_dimension_numbers<[1], [0], [0], [1], [0, 0, 1, 1], [], []>} : vector<8x32xbf16>, vector<32x96xbf16>, vector<8x96xf32> -> vector<8x96xf32>
    %25 = vector.broadcast %20 : vector<1x96xf32> to vector<8x96xf32>
    %26 = arith.addf %24, %25 : vector<8x96xf32>
    %cst_27 = arith.constant dense<0.000000e+00> : vector<8x96xf32>
    %27 = tpu.matmul %1, %17, %cst_27 {dimension_numbers = #tpu.dot_dimension_numbers<[1], [0], [0], [1], [0, 0, 1, 1], [], []>} : vector<8x32xbf16>, vector<32x96xbf16>, vector<8x96xf32> -> vector<8x96xf32>
    %28 = vector.broadcast %21 : vector<1x96xf32> to vector<8x96xf32>
    %29 = arith.addf %27, %28 : vector<8x96xf32>
    %cst_28 = arith.constant dense<0.000000e+00> : vector<8x96xf32>
    %30 = tpu.matmul %1, %19, %cst_28 {dimension_numbers = #tpu.dot_dimension_numbers<[1], [0], [0], [1], [0, 0, 1, 1], [], []>} : vector<8x32xbf16>, vector<32x96xbf16>, vector<8x96xf32> -> vector<8x96xf32>
    %31 = vector.broadcast %23 : vector<1x96xf32> to vector<8x96xf32>
    %32 = arith.addf %30, %31 : vector<8x96xf32>
    %33 = vector.shape_cast %26 : vector<8x96xf32> to vector<1x8x96xf32>
    %34 = vector.shape_cast %29 : vector<8x96xf32> to vector<1x8x96xf32>
    %35 = tpu.concatenate %33, %34 in 1 : vector<1x8x96xf32>, vector<1x8x96xf32> -> vector<1x16x96xf32>
    %36 = arith.truncf %35 : vector<1x16x96xf32> to vector<1x16x96xbf16>
    "tpu.trace_start"() <{level = 10 : i32, message = "bij,bjh->bih"}> : () -> ()
    %cst_29 = arith.constant dense<0.000000e+00> : vector<1x8x96xf32>
    %37 = tpu.matmul %13, %36, %cst_29 {dimension_numbers = #tpu.dot_dimension_numbers<[2], [1], [1], [2], [0, 0, 0, 1, 1, 2], [0], [0]>} : vector<1x8x16xbf16>, vector<1x16x96xbf16>, vector<1x8x96xf32> -> vector<1x8x96xf32>
    "tpu.trace_stop"() : () -> ()
    %38 = vector.shape_cast %37 : vector<1x8x96xf32> to vector<8x96xf32>
    %39 = vector.broadcast %22 : vector<1x96xf32> to vector<8x96xf32>
    %40 = arith.addf %38, %39 : vector<8x96xf32>
    %41 = arith.addf %40, %32 : vector<8x96xf32>
    %42 = vector.extract_strided_slice %41 {offsets = [0, 0], sizes = [8, 32], strides = [1, 1]} : vector<8x96xf32> to vector<8x32xf32>
    %43 = arith.negf %42 : vector<8x32xf32>
    %44 = math.exp %43 : vector<8x32xf32>
    %cst_30 = arith.constant 1.000000e+00 : f32
    %45 = vector.broadcast %cst_30 : f32 to vector<8x32xf32>
    %46 = arith.addf %45, %44 : vector<8x32xf32>
    %47 = arith.divf %45, %46 : vector<8x32xf32>
    %48 = vector.extract_strided_slice %41 {offsets = [0, 32], sizes = [8, 32], strides = [1, 1]} : vector<8x96xf32> to vector<8x32xf32>
    %49 = arith.negf %48 : vector<8x32xf32>
    %50 = math.exp %49 : vector<8x32xf32>
    %cst_31 = arith.constant 1.000000e+00 : f32
    %51 = vector.broadcast %cst_31 : f32 to vector<8x32xf32>
    %52 = arith.addf %51, %50 : vector<8x32xf32>
    %53 = arith.divf %51, %52 : vector<8x32xf32>
    %54 = vector.extract_strided_slice %40 {offsets = [0, 64], sizes = [8, 32], strides = [1, 1]} : vector<8x96xf32> to vector<8x32xf32>
    %55 = vector.extract_strided_slice %32 {offsets = [0, 64], sizes = [8, 32], strides = [1, 1]} : vector<8x96xf32> to vector<8x32xf32>
    %56 = arith.mulf %47, %55 : vector<8x32xf32>
    %57 = arith.addf %54, %56 : vector<8x32xf32>
    %58 = math.tanh %57 : vector<8x32xf32>
    %59 = arith.subf %2, %58 : vector<8x32xf32>
    %60 = arith.mulf %53, %59 : vector<8x32xf32>
    %61 = arith.addf %58, %60 : vector<8x32xf32>
    %cst_32 = arith.constant 5.000000e-01 : f32
    %62 = vector.broadcast %cst_32 : f32 to vector<8x32xf32>
    %63 = arith.mulf %62, %61 : vector<8x32xf32>
    %64 = arith.addf %12, %63 : vector<8x32xf32>
    %c0_33 = arith.constant 0 : index
    %c0_34 = arith.constant 0 : index
    %65 = vector.load %arg7[%c0_33, %c0_34] : memref<8x32xf32, #tpu.memory_space<vmem>>, vector<8x32xf32>
    tpu.vector_store %arg7[%c0_33, %c0_34], %64 {strides = array<i32>} : memref<8x32xf32, #tpu.memory_space<vmem>>, vector<8x32xf32>,
    return
  }
  func.func @transform_0(%arg0: i32) -> (i32, i32, i32) {
    %c0_i32 = arith.constant 0 : i32
    %c0_i32_0 = arith.constant 0 : i32
    %c0_i32_1 = arith.constant 0 : i32
    return %arg0, %c0_i32, %c0_i32_0 : i32, i32, i32
  }
  func.func @transform_1(%arg0: i32) -> (i32, i32, i32) {
    %c0_i32 = arith.constant 0 : i32
    %c0_i32_0 = arith.constant 0 : i32
    %c0_i32_1 = arith.constant 0 : i32
    return %arg0, %c0_i32, %c0_i32_0 : i32, i32, i32
  }
  func.func @transform_2(%arg0: i32) -> (i32, i32, i32) {
    %c0_i32 = arith.constant 0 : i32
    %c0_i32_0 = arith.constant 0 : i32
    %c0_i32_1 = arith.constant 0 : i32
    return %arg0, %c0_i32, %c0_i32_0 : i32, i32, i32
  }
  func.func @transform_3(%arg0: i32) -> (i32, i32, i32) {
    %c0_i32 = arith.constant 0 : i32
    %c0_i32_0 = arith.constant 0 : i32
    %c0_i32_1 = arith.constant 0 : i32
    return %arg0, %c0_i32, %c0_i32_0 : i32, i32, i32
  }
  func.func @transform_4(%arg0: i32) -> (i32, i32, i32) {
    %c0_i32 = arith.constant 0 : i32
    %c0_i32_0 = arith.constant 0 : i32
    %c0_i32_1 = arith.constant 0 : i32
    %c0_i32_2 = arith.constant 0 : i32
    return %c0_i32, %c0_i32_0, %c0_i32_1 : i32, i32, i32
  }
  func.func @transform_5(%arg0: i32) -> (i32, i32) {
    %c0_i32 = arith.constant 0 : i32
    %c0_i32_0 = arith.constant 0 : i32
    %c0_i32_1 = arith.constant 0 : i32
    return %c0_i32, %c0_i32_0 : i32, i32
  }
  func.func @transform_6(%arg0: i32) -> (i32, i32) {
    %c0_i32 = arith.constant 0 : i32
    %c0_i32_0 = arith.constant 0 : i32
    return %arg0, %c0_i32 : i32, i32
  }
}

</mosaic_0001>

<bundles_post_ra>
// kernel: session_graph_forward.1
= control target key start
LH: loop header
LB: loop body
LE: loop exit
PB: predicated region body
PF: predicated region fallthrough
CT: control target
= control target key end

     0   :  { %11 = vsyncpa [#allocation3], 0  ;;  %s983_s0 = inlined_call_operand.vmem [shape: bf16[2,8,8], index: 0, kind: input, shape index: {}]   ;;  %s984_s1 = inlined_call_operand.vmem [shape: bf16[2,8,16], index: 1, kind: input, shape index: {}]   ;;  %s985_s2 = inlined_call_operand.vmem [shape: bf16[2,8,32], index: 2, kind: input, shape index: {}]   ;;  %s986_s3 = inlined_call_operand.vmem [shape: f32[2,8,1], index: 3, kind: input, shape index: {}]   ;;  %s987_s4 = inlined_call_operand.vmem [shape: bf16[3,32,96], index: 4, kind: input, shape index: {}]   ;;  %s988_s5 = inlined_call_operand.vmem [shape: f32[4,96], index: 5, kind: input, shape index: {}]   ;;  %s989_s6 = inlined_call_operand.hbm [shape: f32[16,32], index: 6, kind: output, shape index: {}]  }
   0x1   :  { %13 = vsyncpa [#allocation3 + $0x1], 0  ;;  %s835_s21 = smov 0   ;;  %s837_s22 = smov 0  }
   0x2   :  { %s839_s23 = smov 0   ;;  %s841_s24 = smov 0  }
   0x3 LB: > { %s856_s25 = sadd.s32 4294967295, %s795_s24   ;;  %s622_s26 = sadd.s32 4294967294, %s795_s24   ;;  %s795_s24 = sphi %s841_s24, %s995_s24   ;;  %s791_s23 = sphi %s839_s23, %s994_s23   ;;  %s787_s22 = sphi %s837_s22, %s993_s22   ;;  %s783_s21 = sphi %s835_s21, %s992_s21  }
   0x4   : > { %s860_s27 = sadd.s32 1, %s795_s24   ;;  %s172_s28 = sadd.s32 1, %s791_s23 }
   0x5   : > { %s169_s29 = ssub.s32 %s795_s24, %s860_s27  ;;  %p182_p0 = scmp.ne.s32.totalorder %s791_s23, %s787_s22 }
   0x6   : > { %p170_p1 = scmp.eq.s32.totalorder %s169_s29, 0  ;;  %p183_p2 = scmp.eq.s32.totalorder %s856_s25, 1 }
   0x7   : > { %p188_p3 = scmp.ne.s32.totalorder %s787_s22, %s783_s21  ;;  %p189_p4 = scmp.eq.s32.totalorder %s622_s26, 1 }
   0x8   : > { %s871_s30 = scalar_select %p170_p1, %s791_s23, %s172_s28  }
   0x9   : > { %p873_p5 = por %p183_p2, %p182_p0  ;;  %p877_p6 = por %p189_p4, %p188_p3 }
   0xa   : > { %p625_p7 = scmp.ge.s32.totalorder %s795_s24, 1  ;;  %p241_p8 = scmp.lt.s32.totalorder %s795_s24, 3 }
   0xc   : > { %p242_p9 = pnand %p625_p7, %p241_p8 }
   0xd   : > { %p282_p10 = scmp.lt.s32.totalorder (!%p242_p9), %s856_s25, 1  ;;  %s797_s26 = smov (!%p242_p9), 64  }
   0xe   : > { %245 = sbr.rel (%p242_p9) target bundleno = 903 (0x387), region = 44  ;;  %s279_s17 = sand.u32 (!%p242_p9), 1, %s787_s22  }
   0xf   : > { %s626_s18 = sshll.u32 (!%p242_p9), %s279_s17, 3  ;;  %s670_s20 = sshll.u32 (!%p242_p9), %s856_s25, 3 }
  0x10   : > { %s753_s15 = scalar_lea.hbm (!%p242_p9), %s989_s6, 16 }
  0x13   : > { %v674_v0 = vld [vmem:[%s987_s4 + $0x8] sm:$0xff]  ;;  %v676_v1 = vld [vmem:[%s987_s4 + $0x18] sm:$0xff]  ;;  %v673_v2 = vld [vmem:[%s987_s4] sm:$0xff]  ;;  %s900_s19 = scalar_select %p282_p10, %s856_s25, 1  ;;  %vm306_vm0 = vcmask 1043456   ;;  %vm364_vm1 = vcmask 261120  }
  0x14   : > { %v678_v3 = vld [vmem:[%s987_s4 + $0x28] sm:$0xff]  ;;  %373 = vmatpush.bf16.msra.mxu1 %v674_v0  ;;  %399 = vmatpush.bf16.msra.mxu2 %v676_v1  ;;  %v675_v4 = vld [vmem:[%s987_s4 + $0x10] sm:$0xff]  ;;  %v677_v5 = vld [vmem:[%s987_s4 + $0x20] sm:$0xff]  ;;  %vm302_vm2 = vcmask 64512   ;;  %vm441_vm3 = vcmask 130048   ;;  %v799_v55 = vmov 0  }
  0x15   : > { %425 = vmatpush.bf16.msra.mxu3 %v678_v3  ;;  %s906_s28 = sshll.u32 %s900_s19, 2  ;;  %v723_v9 = vld [vmem:[%s988_s5] ss:$0 sm:$0xff]  ;;  %v724_v12 = vld [vmem:[%s988_s5 + $0x1] ss:$0 sm:$0xff]  ;;  %721 = vset.pattern.permute.xlu2 %v799_v55 }
  0x16   : > { %s293_s10 = scalar_lea.vmem %s985_s2, %s906_s28  ;;  %s285_s13 = scalar_lea.vmem %s983_s0, %s906_s28  ;;  %v725_v13 = vld [vmem:[%s988_s5 + $0x3] ss:$0 sm:$0xff]  ;;  %v726_v29 = vld [vmem:[%s988_s5 + $0x2] ss:$0 sm:$0xff]  ;;  %722 = vset.pattern.permute.xlu0 %v799_v55 }
  0x17   : > { %v912_v6 = vld [vmem:[%s293_s10] sm:$0xf]  ;;  %s289_s10 = scalar_lea.vmem %s984_s1, %s906_s28  ;;  %s798_s28 = smov 32  }
  0x18   : > { %374 = vmatpush.bf16.msra.mxu1 %v673_v2  ;;  %400 = vmatpush.bf16.msra.mxu2 %v675_v4  ;;  %v308_v7 = vsel %vm306_vm0, %v912_v6, 0  ;;  %v301_v8 = vld [vmem:[%s285_s13] sm:$0xf]  ;;  %v300_v52 = vunpack.c.l.bf16 %v912_v6  ;;  %s630_s13 = sshll.u32 %s900_s19, 3  ;;  %s522_s19 = scalar_lea.hbm %s989_s6, %s670_s20 }
  0x19   : > { %426 = vmatpush.bf16.msra.mxu3 %v677_v5  ;;  %317 = vmatpush.bf16.msra.mxu0 %v308_v7  ;;  %v332_v25 = vld [vmem:[%s289_s10] sm:$0xf]  ;;  %s297_s16 = scalar_lea.vmem %s986_s3, %s630_s13  ;;  %s281_s10 = scalar_lea.vmem [#allocation2], %s626_s18 }
  0x1a   : > { %v324_v58 = vld [vmem:[%s297_s16] sm:$0xff]  ;;  %s524_s11 = sshll.u32 %s281_s10, 4  ;;  %s526_s12 = sshll.u32 %s522_s19, 4  ;;  %s525_s11 = int_to_ptr.vmem [resolvable:$true] %s524_s11  ;;  %s527_s12 = int_to_ptr.hbm [resolvable:$true] %s526_s12 }
  0x1b   : > { %648 = vmatmul.msk.bf16.vlgmr.msra.gmra.mxu1 %vm364_vm1, %v912_v6  ;;  %657 = vmatmul.msk.bf16.vlgmr.msra.gmra.mxu2 %vm364_vm1, %v912_v6 }
  0x1c   : > { %666 = vmatmul.msk.bf16.vlgmr.msra.gmra.mxu3 %vm364_vm1, %v912_v6  ;;  %631 = vmatmul.msk.bf16.vlgmr.msra.gmra.mxu0 %vm302_vm2, %v301_v8 }
  0x98   : > { %v376_v10 = vpop.f32.mrf.mxu1 }
  0x99   : > { %v377_v11 = vadd.f32 %v723_v9, %v376_v10  ;;  %v319_v27 = vpop.f32.mrf.mxu0 }
  0x9a   : > { %v323_v0 = vmul.f32 0.25, %v319_v27 }
  0x9b   : > { %v432_v14 = vpack.c.bf16 %v377_v11, %v377_v11 }
  0x9d   : > { %v437_v20 = vunpack.c.l.b16 %v432_v14 }
  0x9e   : > { %v402_v15 = vpop.f32.mrf.mxu2 }
  0x9f   : > { %v403_v16 = vadd.f32 %v724_v12, %v402_v15  ;;  %v428_v17 = vpop.f32.mrf.mxu3 }
  0xa0   : > { %v378_v18 = vpop.f32.mrf.mxu1  ;;  %v429_v19 = vadd.f32 %v725_v13, %v428_v17 }
  0xa1   : > { %v433_v21 = vpack.c.bf16 %v403_v16, %v403_v16  ;;  %v321_v28 = vpop.f32.mrf.mxu0 }
  0xa2   : > { %479 = vrot.lane.b32.xlu0 %v429_v19, %s797_s26 }
  0xa3   : > { %v438_v22 = vunpack.c.l.b16 %v433_v21 }
  0xa5   : > { %v439_v23 = vpack.c.b16 %v438_v22, %v437_v20 }
  0xa6   : > { %v404_v24 = vpop.f32.mrf.mxu2 }
  0xa7   : > { %452 = vmatpush.bf16.msrb.mxu0 %v439_v23  ;;  %v430_v26 = vpop.f32.mrf.mxu3 }
  0xaa   : > { %667 = vmatmul.msk.bf16.vlgmr.msrb.gmra.mxu0 %vm441_vm3, %v332_v25 }
 0x114   : > { %v480_v44 = vpop.permute.xlu0 %479 }
 0x127   : > { %v454_v30 = vpop.f32.mrf.mxu0 }
 0x128   : > { %v455_v31 = vadd.f32 %v726_v29, %v454_v30 }
 0x12a   : > { %v458_v32 = vadd.f32 %v455_v31, %v429_v19 }
 0x12c   : > { %v668_v33 = vmul.f32 -1.442695, %v458_v32 }
 0x12e   : > { %727 = vpow2.f32 %v668_v33 }
 0x12f   : > { %v456_v34 = vpop.f32.mrf.mxu0 }
 0x134   : > { %v728_v35 = vpop.eup %727 }
 0x135   : > { %v462_v36 = vadd.f32 1.0, %v728_v35 }
 0x137   : > { %729 = vrcp.f32 %v462_v36  ;;  %v474_v40 = vand.u32 2147483648, %v462_v36  ;;  %v472_v42 = vand.u32 2147483647, %v462_v36  ;;  %vm468_vm5 = vweird.f32 %v462_v36 }
 0x139   : > { %v475_v45 = vor.u32 1.1754944e-38, %v474_v40  ;;  %vm473_vm7 = vcmp.eq.f32.partialorder %v472_v42, 8.507059e+37 }
 0x13d   : > { %v730_v37 = vpop.eup %729 }
 0x13e   : > { %v464_v38 = vmul.f32 %v730_v37, %v462_v36  ;;  %vm469_vm4 = vweird.f32 %v730_v37 }
 0x13f   : > { %vm470_vm6 = vmor %vm468_vm5, %vm469_vm4 }
 0x140   : > { %v465_v39 = vsub.f32 1.0, %v464_v38 }
 0x142   : > { %v466_v41 = vmul.f32 %v730_v37, %v465_v39 }
 0x144   : > { %v467_v43 = vadd.f32 %v730_v37, %v466_v41 }
 0x146   : > { %v471_v46 = vsel %vm470_vm6, %v730_v37, %v467_v43 }
 0x147   : > { %v476_v47 = vsel %vm473_vm7, %v475_v45, %v471_v46 }
 0x148   : > { %v482_v48 = vmul.f32 %v480_v44, %v476_v47 }
 0x14a   : > { %484 = vrot.lane.b32.xlu0 %v482_v48, %s797_s26 }
 0x1bc   : > { %v485_v49 = vpop.permute.xlu0 %484 }
 0x1bd   : > { %v487_v50 = vadd.f32 %v485_v49, %v455_v31 }
 0x1bf   : > { %731 = vtanh.f32 %v487_v50 }
 0x1c5   : > { %v732_v51 = vpop.eup %731 }
 0x1c6   : > { %490 = vrot.lane.b32.xlu1 %v732_v51, %s797_s26 }
 0x238   : > { %v491_v53 = vpop.permute.xlu1 %490 }
 0x239   : > { %v493_v54 = vsub.f32 %v300_v52, %v491_v53 }
 0x23b   : > { %495 = vrot.lane.b32.xlu1 %v493_v54, %s798_s28 }
 0x2ad   : > { %v496_v56 = vpop.permute.xlu1 %495 }
 0x2ae   : > { %v498_v57 = vmul.f32 %v496_v56, %v476_v47 }
 0x2b0   : > { %500 = vrot.lane.b32.xlu2 %v498_v57, %s798_s28  ;;  %s747_s28 = sshra.s32 %s527_s12, 4  ;;  %s748_s28 = int_to_ptr.hbm [resolvable:$true] %s747_s28 }
 0x2b1   : > { %s749_s25 = scalar_lea.hbm %s748_s28, 8  ;;  %p754_p0 = scmp.lt.s32.totalorder %s748_s28, %s989_s6 }
 0x2b2   : > { %p750_p11 = scmp.ne.s32.totalorder %s748_s28, %s749_s25  ;;  %p755_p1 = scmp.lt.s32.totalorder %s753_s15, %s749_s25 }
 0x2b4   : > { %p751_p12 = pnand %p750_p11, %p873_p5  ;;  %p756_p2 = por %p755_p1, %p754_p0 }
 0x2b6   : > { %p752_p13 = pneg %p751_p12 }
 0x2b8   : > { %327 = vperm.xlu2 %721, %v324_v58   ;;  %p757_p3 = pnand %p756_p2, %p752_p13 }
 0x30a   : > { %v501_v59 = vpop.permute.xlu2 %500 }
 0x30b   : > { %v503_v60 = vadd.f32 %v732_v51, %v501_v59 }
 0x30d   : > { %v504_v61 = vmul.f32 0.5, %v503_v60 }
 0x30f   : > { %506 = vrot.lane.b32.xlu0 %v504_v61, %s797_s26  ;;  %s512_s26 = scalar_lea.sflag [#allocation3], %s279_s17 }
 0x312   : > { %v328_v62 = vpop.permute.xlu2 %327 }
 0x313   : > { %v330_v63 = vmul.f32 %v328_v62, %v300_v52 }
 0x315   : > { %v331_v1 = vadd.f32 %v330_v63, %v323_v0 }
 0x381   : > { %v507_v2 = vpop.permute.xlu0 %506 }
 0x382   : > { %v509_v3 = vadd.f32 %v507_v2, %v331_v1 }
 0x384   : > { %510 = vst.msk [vmem:[%s281_s10] sm:$0xff] %vm364_vm1, %v509_v3 }
 0x385   : > { %760 = shalt.err (!%p757_p3)
}
 0x386   : > { %679 = dma.vmem_to_hbm [thread:$0]  (%p873_p5), %s525_s11, 128, %s527_s12, %s512_s26  }
 0x387 PF: > { %p685_p4 = scmp.ge.s32.totalorder %s795_s24, 2  ;;  %s538_s17 = sand.u32 1, %s783_s21  }
 0x388   : > { %s539_s20 = scalar_lea.sflag [#allocation3], %s538_s17 }
 0x389   : > { %p682_p7 = pnand %p685_p4, %p877_p6 }
 0x38b   : > { %p683_p8 = pneg %p682_p7 }
 0x38d   : > { %778 = dma.done.wait (%p683_p8), %s539_s20, 128  }
 0x38e   : > { %780 = vsyncadd (%p683_p8), %s539_s20, 4294967168  ;;  %p16_p9 = scmp.ge.s32.totalorder %s860_s27, 4   ;;  %s992_s21 = smov %s787_s22 }
 0x38f   : > { %s993_s22 = smov %s791_s23  ;;  %s994_s23 = smov %s871_s30 }
 0x390   : > { %s995_s24 = smov %s860_s27  ;;  %18 = sbr.rel (!%p16_p9) target bundleno = 3 (0x3), region = 90 }
 0x395   :  { %545 = vsyncpa [#allocation3], 1 }
 0x396   :  { %547 = vsyncpa [#allocation3 + $0x1], 1 }

</bundles_post_ra>
